<compile_context>
chip_gen: v7x
topology: tpu7x:2x2x1
jax: 0.10.0
libtpu: 0.0.40
codegen_flags: <defaults>
</compile_context>

<pallas_src>
import functools

import jax
import jax.numpy as jnp
from jax.experimental import pallas as pl
from jax.experimental.pallas import tpu as pltpu


def fused_fc_tanh_kernel(a_ref, v_ref, t_ref, wa_ref, wv_ref, wt_ref, b_ref, o_ref):
    """Fused concat + Linear + Tanh.

    The concat is folded into three partial MXU matmuls (one per modality),
    accumulated in f32; bias add and tanh stay in f32.
    """
    acc = jnp.dot(a_ref[...], wa_ref[...], preferred_element_type=jnp.float32)
    acc = acc + jnp.dot(v_ref[...], wv_ref[...], preferred_element_type=jnp.float32)
    acc = acc + jnp.dot(t_ref[...], wt_ref[...], preferred_element_type=jnp.float32)
    acc = acc + b_ref[...]            # b is [1, C], broadcasts over rows
    o_ref[...] = jnp.tanh(acc).astype(o_ref.dtype)


def prepare_params(w, b, audio_dim, visual_dim, text_dim):
    """One-time (module-init) parameter prep, hoisted out of the jitted forward.

    w: [K, C] where K = audio_dim + visual_dim + text_dim (torch weight.T)
    b: [C] or [1, C]
    Returns per-modality weight slabs and a [1, C] f32 bias.
    """
    K, C = w.shape
    assert K == audio_dim + visual_dim + text_dim, (
        "weight K must equal sum of modality dims ('ecat')"
    )
    w = w.astype(jnp.float32)
    wa = w[:audio_dim]
    wv = w[audio_dim:audio_dim + visual_dim]
    wt = w[audio_dim + visual_dim:]
    b2 = b.reshape(1, C).astype(jnp.float32)
    return wa, wv, wt, b2


def _round_up(x, m):
    return ((x + m - 1) // m) * m


def bert_encoder_forward(audf, visf, texf, wa, wv, wt, b, *, row_tile=2048):
    """Pallas implementation of BertEncoder.forward for the 'ecat' fusion path.

    audf: [B, S, A], visf: [B, S, V], texf: [B, S, T]  (float32)
    wa/wv/wt: per-modality weight slabs [A, C] / [V, C] / [T, C]
    b:  [1, C]
    returns: [B*S, C] float32
    """
    A = audf.shape[-1]
    V = visf.shape[-1]
    T = texf.shape[-1]

    # Free reshapes (contiguous layout) — the concat is folded into the kernel
    # as three partial matmuls, so no fused activation tensor ever hits HBM.
    a2 = audf.reshape(-1, A)
    v2 = visf.reshape(-1, V)
    t2 = texf.reshape(-1, T)
    N = a2.shape[0]

    C = wa.shape[-1]
    K = A + V + T
    assert wa.shape[0] == A and wv.shape[0] == V and wt.shape[0] == T
    assert row_tile % 8 == 0

    # --- Row tiling.
    # With lane padding, each (TN, A/V/T) f32 input tile and the (TN, C)
    # output tile occupy TN * 128 * 4 B of VMEM, double-buffered:
    #   VMEM ≈ 2 buffers * 4 arrays * TN * 128 * 4 B ≈ TN * 4 KiB.
    # row_tile=2048 -> ~8 MiB: under v5e's 16 MiB scoped default and well
    # under v6e/v7x's 32 MiB. Per-generation tuning (memory-bound kernel, so
    # bigger tiles = fewer grid steps = closer to HBM roofline):
    #   v5e: keep <= 2048 (or raise vmem_limit_bytes past the 16 MiB default)
    #   v7x: <= ~4096 (only 64 MiB physical VMEM per TC)
    #   v6e: up to 8192 with pltpu.CompilerParams(vmem_limit_bytes=48-64 MiB)
    if N <= 64:
        TN = N                                        # full-extent block (always legal)
    else:
        # Guarantee >= 2 tiles so the "parallel" axis can shard across v7x's
        # two TensorCores; neutral on single-TC v5e/v6e.
        TN = min(row_tile, _round_up(pl.cdiv(N, 2), 8))
    grid = (pl.cdiv(N, TN),)

    cost = pl.CostEstimate(
        flops=2 * N * K * C,
        transcendentals=N * C,                                   # tanh
        bytes_accessed=4 * (N * (K + C) + K * C + C),
    )

    out = pl.pallas_call(
        fused_fc_tanh_kernel,
        out_shape=jax.ShapeDtypeStruct((N, C), jnp.float32),
        grid=grid,
        in_specs=[
            pl.BlockSpec((TN, A), lambda i: (i, 0)),   # audio rows
            pl.BlockSpec((TN, V), lambda i: (i, 0)),   # visual rows
            pl.BlockSpec((TN, T), lambda i: (i, 0)),   # text rows
            pl.BlockSpec((A, C), lambda i: (0, 0)),    # resident weight slabs
            pl.BlockSpec((V, C), lambda i: (0, 0)),
            pl.BlockSpec((T, C), lambda i: (0, 0)),
            pl.BlockSpec((1, C), lambda i: (0, 0)),    # resident bias
        ],
        out_specs=pl.BlockSpec((TN, C), lambda i: (i, 0)),
        compiler_params=pltpu.CompilerParams(
            # Row tiles are independent -> shard across v7x's 2 TensorCores.
            dimension_semantics=("parallel",),
        ),
        cost_estimate=cost,
    )(a2, v2, t2, wa, wv, wt, b)

    return out


if __name__ == "__main__":
    # Small shapes consistent with the module's forward:
    batch, seq = 2, 8
    audio_dim, visual_dim, text_dim = 16, 24, 32
    code_length = 32
    fc_in_dim = audio_dim + visual_dim + text_dim  # 'ecat' with modals = 'avl'

    key = jax.random.PRNGKey(0)
    k_a, k_v, k_t, k_w, k_b = jax.random.split(key, 5)

    audf = jax.random.normal(k_a, (batch, seq, audio_dim), dtype=jnp.float32)
    visf = jax.random.normal(k_v, (batch, seq, visual_dim), dtype=jnp.float32)
    texf = jax.random.normal(k_t, (batch, seq, text_dim), dtype=jnp.float32)

    # Deterministic parameter init (nn.Linear(fc_in_dim, code_length)).
    # Stored as [K, C] = weight.T relative to PyTorch's [out, in].
    bound = 1.0 / (float(fc_in_dim) ** 0.5)
    w = jax.random.uniform(
        k_w, (fc_in_dim, code_length), dtype=jnp.float32, minval=-bound, maxval=bound
    )
    b = jax.random.uniform(
        k_b, (1, code_length), dtype=jnp.float32, minval=-bound, maxval=bound
    )

    # One-time parameter prep, hoisted out of the jitted forward path.
    wa, wv, wt, b2 = prepare_params(w, b, audio_dim, visual_dim, text_dim)

    fwd = jax.jit(functools.partial(bert_encoder_forward, row_tile=2048))
    out = fwd(audf, visf, texf, wa, wv, wt, b2)
    out = jax.block_until_ready(out)

    # Reference check against plain JAX (same math as the PyTorch module).
    # Both the kernel and the reference use the default TPU matmul precision,
    # so only a modest tolerance is needed.
    x_ref = jnp.concatenate(
        [
            audf.reshape(-1, audio_dim),
            visf.reshape(-1, visual_dim),
            texf.reshape(-1, text_dim),
        ],
        axis=-1,
    )
    ref = jnp.tanh(x_ref @ w + b)
    assert out.shape == (batch * seq, code_length)
    assert jnp.allclose(out, ref, atol=1e-2, rtol=1e-2), (
        float(jnp.max(jnp.abs(out - ref)))
    )

    print("KERNEL_OK")
</pallas_src>

<mosaic_0001>
module attributes {stable_mosaic.version = 11 : i64} {
  func.func @fused_fc_tanh_kernel(%arg0: i32, %arg1: memref<16x16xf32, #tpu.memory_space<vmem>>, %arg2: memref<16x24xf32, #tpu.memory_space<vmem>>, %arg3: memref<16x32xf32, #tpu.memory_space<vmem>>, %arg4: memref<16x32xf32, #tpu.memory_space<vmem>>, %arg5: memref<24x32xf32, #tpu.memory_space<vmem>>, %arg6: memref<32x32xf32, #tpu.memory_space<vmem>>, %arg7: memref<1x32xf32, #tpu.memory_space<vmem>>, %arg8: memref<16x32xf32, #tpu.memory_space<vmem>>) attributes {dimension_semantics = [#tpu.dimension_semantics<parallel>], iteration_bounds = array<i64: 1>, scalar_prefetch = 0 : i64, scratch_operands = 0 : i64, tpu.core_type = #tpu.core_type<tc>, window_params = [{transform_indices = @transform_0, window_bounds = array<i64: 16, 16>}, {transform_indices = @transform_1, window_bounds = array<i64: 16, 24>}, {transform_indices = @transform_2, window_bounds = array<i64: 16, 32>}, {pipeline_mode = #tpu.pipeline_mode<synchronous>, transform_indices = @transform_3, window_bounds = array<i64: 16, 32>}, {pipeline_mode = #tpu.pipeline_mode<synchronous>, transform_indices = @transform_4, window_bounds = array<i64: 24, 32>}, {pipeline_mode = #tpu.pipeline_mode<synchronous>, transform_indices = @transform_5, window_bounds = array<i64: 32, 32>}, {pipeline_mode = #tpu.pipeline_mode<synchronous>, transform_indices = @transform_6, window_bounds = array<i64: 1, 32>}, {transform_indices = @transform_7, window_bounds = array<i64: 16, 32>}]} {
    %c0 = arith.constant 0 : index
    %c0_0 = arith.constant 0 : index
    %0 = vector.load %arg1[%c0, %c0_0] : memref<16x16xf32, #tpu.memory_space<vmem>>, vector<16x16xf32>
    %c0_1 = arith.constant 0 : index
    %c0_2 = arith.constant 0 : index
    %1 = vector.load %arg4[%c0_1, %c0_2] : memref<16x32xf32, #tpu.memory_space<vmem>>, vector<16x32xf32>
    %cst = arith.constant dense<0.000000e+00> : vector<16x32xf32>
    %2 = tpu.matmul %0, %1, %cst {dimension_numbers = #tpu.dot_dimension_numbers<[1], [0], [0], [1], [0, 0, 1, 1], [], []>} : vector<16x16xf32>, vector<16x32xf32>, vector<16x32xf32> -> vector<16x32xf32>
    %c0_3 = arith.constant 0 : index
    %c0_4 = arith.constant 0 : index
    %3 = vector.load %arg2[%c0_3, %c0_4] : memref<16x24xf32, #tpu.memory_space<vmem>>, vector<16x24xf32>
    %c0_5 = arith.constant 0 : index
    %c0_6 = arith.constant 0 : index
    %4 = vector.load %arg5[%c0_5, %c0_6] : memref<24x32xf32, #tpu.memory_space<vmem>>, vector<24x32xf32>
    %cst_7 = arith.constant dense<0.000000e+00> : vector<16x32xf32>
    %5 = tpu.matmul %3, %4, %cst_7 {dimension_numbers = #tpu.dot_dimension_numbers<[1], [0], [0], [1], [0, 0, 1, 1], [], []>} : vector<16x24xf32>, vector<24x32xf32>, vector<16x32xf32> -> vector<16x32xf32>
    %6 = arith.addf %2, %5 : vector<16x32xf32>
    %c0_8 = arith.constant 0 : index
    %c0_9 = arith.constant 0 : index
    %7 = vector.load %arg3[%c0_8, %c0_9] : memref<16x32xf32, #tpu.memory_space<vmem>>, vector<16x32xf32>
    %c0_10 = arith.constant 0 : index
    %c0_11 = arith.constant 0 : index
    %8 = vector.load %arg6[%c0_10, %c0_11] : memref<32x32xf32, #tpu.memory_space<vmem>>, vector<32x32xf32>
    %cst_12 = arith.constant dense<0.000000e+00> : vector<16x32xf32>
    %9 = tpu.matmul %7, %8, %cst_12 {dimension_numbers = #tpu.dot_dimension_numbers<[1], [0], [0], [1], [0, 0, 1, 1], [], []>} : vector<16x32xf32>, vector<32x32xf32>, vector<16x32xf32> -> vector<16x32xf32>
    %10 = arith.addf %6, %9 : vector<16x32xf32>
    %c0_13 = arith.constant 0 : index
    %c0_14 = arith.constant 0 : index
    %11 = vector.load %arg7[%c0_13, %c0_14] : memref<1x32xf32, #tpu.memory_space<vmem>>, vector<1x32xf32>
    %12 = vector.broadcast %11 : vector<1x32xf32> to vector<16x32xf32>
    %13 = arith.addf %10, %12 : vector<16x32xf32>
    %14 = math.tanh %13 : vector<16x32xf32>
    %c0_15 = arith.constant 0 : index
    %c0_16 = arith.constant 0 : index
    %15 = vector.load %arg8[%c0_15, %c0_16] : memref<16x32xf32, #tpu.memory_space<vmem>>, vector<16x32xf32>
    tpu.vector_store %arg8[%c0_15, %c0_16], %14 {strides = array<i32>} : memref<16x32xf32, #tpu.memory_space<vmem>>, vector<16x32xf32>,
    return
  }
  func.func @transform_0(%arg0: i32) -> (i32, i32) {
    %c0_i32 = arith.constant 0 : i32
    %c0_i32_0 = arith.constant 0 : i32
    return %arg0, %c0_i32 : i32, i32
  }
  func.func @transform_1(%arg0: i32) -> (i32, i32) {
    %c0_i32 = arith.constant 0 : i32
    %c0_i32_0 = arith.constant 0 : i32
    return %arg0, %c0_i32 : i32, i32
  }
  func.func @transform_2(%arg0: i32) -> (i32, i32) {
    %c0_i32 = arith.constant 0 : i32
    %c0_i32_0 = arith.constant 0 : i32
    return %arg0, %c0_i32 : i32, i32
  }
  func.func @transform_3(%arg0: i32) -> (i32, i32) {
    %c0_i32 = arith.constant 0 : i32
    %c0_i32_0 = arith.constant 0 : i32
    %c0_i32_1 = arith.constant 0 : i32
    return %c0_i32, %c0_i32_0 : i32, i32
  }
  func.func @transform_4(%arg0: i32) -> (i32, i32) {
    %c0_i32 = arith.constant 0 : i32
    %c0_i32_0 = arith.constant 0 : i32
    %c0_i32_1 = arith.constant 0 : i32
    return %c0_i32, %c0_i32_0 : i32, i32
  }
  func.func @transform_5(%arg0: i32) -> (i32, i32) {
    %c0_i32 = arith.constant 0 : i32
    %c0_i32_0 = arith.constant 0 : i32
    %c0_i32_1 = arith.constant 0 : i32
    return %c0_i32, %c0_i32_0 : i32, i32
  }
  func.func @transform_6(%arg0: i32) -> (i32, i32) {
    %c0_i32 = arith.constant 0 : i32
    %c0_i32_0 = arith.constant 0 : i32
    %c0_i32_1 = arith.constant 0 : i32
    return %c0_i32, %c0_i32_0 : i32, i32
  }
  func.func @transform_7(%arg0: i32) -> (i32, i32) {
    %c0_i32 = arith.constant 0 : i32
    %c0_i32_0 = arith.constant 0 : i32
    return %arg0, %c0_i32 : i32, i32
  }
}

</mosaic_0001>

<bundles_post_ra>
// kernel: bert_encoder_forward.1
= control target key start
LH: loop header
LB: loop body
LE: loop exit
PB: predicated region body
PF: predicated region fallthrough
CT: control target
= control target key end

     0   :  { %12 = vsyncpa [#allocation3], 0  ;;  %s781_s0 = inlined_call_operand.hbm [shape: f32[16,16], index: 0, kind: input, shape index: {}]   ;;  %s782_s1 = inlined_call_operand.hbm [shape: f32[16,24], index: 1, kind: input, shape index: {}]   ;;  %s783_s2 = inlined_call_operand.hbm [shape: f32[16,32], index: 2, kind: input, shape index: {}]   ;;  %s784_s3 = inlined_call_operand.hbm [shape: f32[16,32], index: 3, kind: input, shape index: {}]   ;;  %s785_s4 = inlined_call_operand.vmem [shape: f32[24,32], index: 4, kind: input, shape index: {}]   ;;  %s786_s5 = inlined_call_operand.hbm [shape: f32[32,32], index: 5, kind: input, shape index: {}]   ;;  %s787_s6 = inlined_call_operand.vmem [shape: f32[1,32], index: 6, kind: input, shape index: {}]   ;;  %s788_s7 = inlined_call_operand.hbm [shape: f32[16,32], index: 7, kind: output, shape index: {}]  }
   0x1   :  { %13 = vsyncpa [#allocation6], 0 }
   0x2   :  { %14 = vsyncpa [#allocation9], 0 }
   0x3   :  { %15 = vsyncpa [#allocation4], 0  ;;  %s611_s24 = smov [#allocation5]   ;;  %s612_s26 = smov [#allocation8]  }
   0x4   :  { %s33_s25 = sshll.u32 %s611_s24, 4  ;;  %s57_s27 = sshll.u32 %s612_s26, 4  ;;  %s34_s25 = int_to_ptr.vmem [resolvable:$true] %s33_s25  ;;  %s659_s27 = int_to_ptr.vmem [resolvable:$true] %s57_s27 }
   0x5   :  { %s471_s30 = scalar_lea.hbm %s782_s1, 256 }
   0x6   :  { %p472_p0 = scmp.ne.s32.totalorder %s782_s1, %s471_s30  ;;  %p475_p1 = scmp.lt.u32.totalorder %s471_s30, %s782_s1 }
   0x8   :  { %p477_p2 = pnand %p475_p1, %p472_p0 }
   0xa   :  { %480 = shalt.err (!%p477_p2)
}
   0xb   :  { %s481_s12 = scalar_lea.vmem %s34_s25, 256  ;;  %p486_p4 = scmp.lt.s32.totalorder %s34_s25, %s34_s25 }
   0xc   :  { %p482_p3 = scmp.ne.s32.totalorder %s34_s25, %s481_s12  ;;  %p487_p5 = scmp.lt.s32.totalorder %s481_s12, %s481_s12 }
   0xe   :  { %p488_p6 = por %p487_p5, %p486_p4 }
  0x10   :  { %p489_p7 = pnand %p488_p6, %p482_p3 }
  0x12   :  { %492 = shalt.err (!%p489_p7)
}
  0x13   :  { %s613_s13 = smov 128   ;;  %s614_s14 = smov 8  }
  0x14   :  { %39 = dma.hbm_to_vmem [thread:$0]  %s782_s1, 256, %s34_s25, [#allocation6], %s613_s13, %s613_s13, %s614_s14  }
  0x15   :  { %s493_s19 = scalar_lea.hbm %s784_s3, 256 }
  0x16   :  { %p494_p8 = scmp.ne.s32.totalorder %s784_s3, %s493_s19  ;;  %p497_p9 = scmp.lt.u32.totalorder %s493_s19, %s784_s3 }
  0x18   :  { %p499_p10 = pnand %p497_p9, %p494_p8 }
  0x1a   :  { %502 = shalt.err (!%p499_p10)
}
  0x1b   :  { %s503_s24 = scalar_lea.vmem %s659_s27, 256  ;;  %p508_p12 = scmp.lt.s32.totalorder %s659_s27, %s659_s27 }
  0x1c   :  { %p504_p11 = scmp.ne.s32.totalorder %s659_s27, %s503_s24  ;;  %p509_p13 = scmp.lt.s32.totalorder %s503_s24, %s503_s24 }
  0x1e   :  { %p510_p0 = por %p509_p13, %p508_p12 }
  0x20   :  { %p511_p1 = pnand %p510_p0, %p504_p11 }
  0x22   :  { %514 = shalt.err (!%p511_p1)
}
  0x23   :  { %63 = dma.hbm_to_vmem [thread:$0]  %s784_s3, 256, %s659_s27, [#allocation9], %s613_s13, %s613_s13, %s614_s14  }
  0x24   :  { %s615_s26 = smov [#allocation2]   ;;  %s616_s29 = smov [#allocation7]  }
  0x25   :  { %s21_s28 = sshll.u32 %s615_s26, 4  ;;  %s45_s30 = sshll.u32 %s616_s29, 4  ;;  %s22_s28 = int_to_ptr.vmem [resolvable:$true] %s21_s28  ;;  %s696_s30 = int_to_ptr.vmem [resolvable:$true] %s45_s30 }
  0x26   :  { %s515_s10 = scalar_lea.hbm %s781_s0, 256 }
  0x27   :  { %p516_p2 = scmp.ne.s32.totalorder %s781_s0, %s515_s10  ;;  %p519_p3 = scmp.lt.u32.totalorder %s515_s10, %s781_s0 }
  0x29   :  { %p521_p4 = pnand %p519_p3, %p516_p2 }
  0x2b   :  { %524 = shalt.err (!%p521_p4)
}
  0x2c   :  { %s525_s3 = scalar_lea.vmem %s22_s28, 256  ;;  %p530_p6 = scmp.lt.s32.totalorder %s22_s28, %s22_s28 }
  0x2d   :  { %p526_p5 = scmp.ne.s32.totalorder %s22_s28, %s525_s3  ;;  %p531_p7 = scmp.lt.s32.totalorder %s525_s3, %s525_s3 }
  0x2f   :  { %p532_p8 = por %p531_p7, %p530_p6 }
  0x31   :  { %p533_p9 = pnand %p532_p8, %p526_p5 }
  0x33   :  { %536 = shalt.err (!%p533_p9)
}
  0x34   :  { %27 = dma.hbm_to_vmem [thread:$0]  %s781_s0, 256, %s22_s28, [#allocation3], %s613_s13, %s613_s13, %s614_s14  }
  0x35   :  { %s537_s20 = scalar_lea.hbm %s783_s2, 256 }
  0x36   :  { %p538_p10 = scmp.ne.s32.totalorder %s783_s2, %s537_s20  ;;  %p541_p11 = scmp.lt.u32.totalorder %s537_s20, %s783_s2 }
  0x38   :  { %p543_p12 = pnand %p541_p11, %p538_p10 }
  0x3a   :  { %546 = shalt.err (!%p543_p12)
}
  0x3b   :  { %s547_s1 = scalar_lea.vmem %s696_s30, 256  ;;  %p552_p0 = scmp.lt.s32.totalorder %s696_s30, %s696_s30 }
  0x3c   :  { %p548_p13 = scmp.ne.s32.totalorder %s696_s30, %s547_s1  ;;  %p553_p1 = scmp.lt.s32.totalorder %s547_s1, %s547_s1 }
  0x3e   :  { %p554_p2 = por %p553_p1, %p552_p0 }
  0x40   :  { %p555_p3 = pnand %p554_p2, %p548_p13 }
  0x42   :  { %558 = shalt.err (!%p555_p3)
}
  0x43   :  { %51 = dma.hbm_to_vmem [thread:$0]  %s783_s2, 256, %s696_s30, [#allocation6], %s613_s13, %s613_s13, %s614_s14  }
  0x44   :  { %s617_s26 = smov [#allocation10]   ;;  %s559_s9 = scalar_lea.hbm %s786_s5, 512 }
  0x45   :  { %s71_s28 = sshll.u32 %s617_s26, 4  ;;  %p560_p4 = scmp.ne.s32.totalorder %s786_s5, %s559_s9  ;;  %s72_s28 = int_to_ptr.vmem [resolvable:$true] %s71_s28 }
  0x46   :  { %p563_p5 = scmp.lt.u32.totalorder %s559_s9, %s786_s5 }
  0x48   :  { %p565_p6 = pnand %p563_p5, %p560_p4 }
  0x4a   :  { %568 = shalt.err (!%p565_p6)
}
  0x4b   :  { %s569_s16 = scalar_lea.vmem %s72_s28, 512  ;;  %p574_p8 = scmp.lt.s32.totalorder %s72_s28, %s72_s28 }
  0x4c   :  { %p570_p7 = scmp.ne.s32.totalorder %s72_s28, %s569_s16  ;;  %p575_p9 = scmp.lt.s32.totalorder %s569_s16, %s569_s16 }
  0x4e   :  { %p576_p10 = por %p575_p9, %p574_p8 }
  0x50   :  { %p577_p11 = pnand %p576_p10, %p570_p7 }
  0x52   :  { %580 = shalt.err (!%p577_p11)
}
  0x53   :  { %77 = dma.hbm_to_vmem [thread:$0]  %s786_s5, 512, %s72_s28, [#allocation9], %s613_s13, %s613_s13, %s614_s14  }
  0x54   :  { %603 = dma.done.wait [#allocation3], 256  }
  0x55   :  { %604 = vsyncadd [#allocation3], 4294967040 }
  0x56   :  { %605 = dma.done.wait [#allocation6], 512  }
  0x57   :  { %606 = vsyncadd [#allocation6], 4294966784 }
  0x58   :  { %607 = dma.done.wait [#allocation9], 768  }
  0x59   :  { %608 = vsyncadd [#allocation9], 4294966528  ;;  %vm104_vm0 = vcmask 195584   ;;  %v101_v0 = vld [vmem:[%s785_s4] sm:$0xff]  ;;  %v102_v1 = vld [vmem:[%s785_s4 + $0x8] sm:$0xff]  ;;  %vm274_vm1 = vcmask 261120  }
  0x5a   :  { %v439_v2 = vpack.c.bf16 %v102_v1, %v101_v0  ;;  %v103_v3 = vld [vmem:[%s785_s4 + $0x10] sm:$0xff]  ;;  %v98_v6 = vld [vmem:[#allocation8 + $0x8] sm:$0xff]  ;;  %v270_v7 = vld [vmem:[#allocation10] sm:$0xff]  ;;  %vm186_vm2 = vcmask 130048   ;;  %s618_s21 = smov [#allocation11]  }
  0x5b   :  { %v99_v4 = vld [vmem:[#allocation5] sm:$0xff]  ;;  %v271_v8 = vld [vmem:[#allocation10 + $0x8] sm:$0xff]  ;;  %v273_v11 = vld [vmem:[#allocation10 + $0x18] sm:$0xff]  ;;  %s376_s22 = sshll.u32 %s618_s21, 4  ;;  %s377_s22 = int_to_ptr.vmem [resolvable:$true] %s376_s22 }
  0x5c   :  { %v97_v5 = vld [vmem:[#allocation8] sm:$0xff]  ;;  %418 = vmatprep.mubr.msk.f32.mxu0 %vm104_vm0, %v99_v4  ;;  %440 = vmatprep.subr.bf16.mxu0 %v439_v2  ;;  %v447_v9 = vpack.c.bf16 %v271_v8, %v270_v7  ;;  %v268_v13 = vld [vmem:[#allocation7] sm:$0xff]  ;;  %v100_v15 = vld [vmem:[#allocation5 + $0x8] sm:$0xff]  ;;  %s581_s23 = scalar_lea.vmem %s377_s22, 256  ;;  %p586_p13 = scmp.lt.s32.totalorder %s377_s22, %s377_s22 }
  0x5d   :  { %v272_v10 = vld [vmem:[#allocation10 + $0x10] sm:$0xff]  ;;  %442 = vmatpush3.bf16.msra.mxu0 %v439_v2  ;;  %v443_v14 = vpack.c.bf16 %v98_v6, %v97_v5  ;;  %436 = vmatprep.mubr.msk.f32.mxu1 %vm274_vm1, %v268_v13  ;;  %v95_v16 = vld [vmem:[#allocation2] sm:$0xff]  ;;  %v269_v17 = vld [vmem:[#allocation7 + $0x8] sm:$0xff]  ;;  %p582_p12 = scmp.ne.s32.totalorder %s377_s22, %s581_s23  ;;  %p587_p0 = scmp.lt.s32.totalorder %s581_s23, %s581_s23 }
  0x5e   :  { %v451_v12 = vpack.c.bf16 %v273_v11, %v272_v10  ;;  %416 = vmatprep.subr.mxu0 %v103_v3  ;;  %448 = vmatprep.subr.bf16.mxu1 %v447_v9  ;;  %v96_v18 = vld [vmem:[#allocation2 + $0x8] sm:$0xff]  ;;  %v396_v22 = vld [vmem:[%s787_s6] ss:$0 sm:$0xff] }
  0x5f   :  { %450 = vmatpush3.bf16.msra.mxu1 %v447_v9  ;;  %p588_p1 = por %p587_p0, %p586_p13 }
  0x60   :  { %452 = vmatprep.subr.bf16.mxu1 %v451_v12 }
  0x61   :  { %417 = vmatpush3.msra.mxu0 %v103_v3  ;;  %p589_p2 = pnand %p588_p1, %p582_p12 }
  0x62   :  { %419 = vmatmul.mubr.msk.f32.vlgmr.msra.gmra.mrb[0].mxu0 %vm104_vm0, %v100_v15  ;;  %444 = vmatprep.subr.bf16.mxu0 %v443_v14 }
  0x63   :  { %446 = vmatpush3.bf16.msra.mxu0 %v443_v14  ;;  %454 = vmatpush3.bf16.msra.mxu1 %v451_v12 }
  0x64   :  { %425 = vmatprep.mubr.msk.f32.mxu0 %vm186_vm2, %v95_v16 }
  0x66   :  { %437 = vmatmul.mubr.msk.f32.vlgmr.msra.gmra.mrb[0].mxu1 %vm274_vm1, %v269_v17 }
  0x6a   :  { %426 = vmatmul.mubr.msk.f32.vlgmr.msra.gmra.mrb[0].mxu0 %vm186_vm2, %v96_v18 }
 0x139   :  { %v438_v19 = vpop.f32.mrb[0].mxu1 }
 0x13a   :  { %v347_v20 = vpop.f32.mrb[1].mxu1 }
 0x13d   :  { %v427_v21 = vpop.f32.mrb[0].mxu0 }
 0x13e   :  { %v455_v23 = vadd.f32 %v438_v19, %v427_v21  ;;  %v259_v24 = vpop.f32.mrb[1].mxu0 }
 0x13f   :  { %v456_v25 = vadd.f32 %v347_v20, %v259_v24 }
 0x140   :  { %v366_v26 = vadd.f32 %v455_v23, %v396_v22 }
 0x141   :  { %v365_v27 = vadd.f32 %v456_v25, %v396_v22 }
 0x142   :  { %467 = vtanh.f32 %v366_v26 }
 0x143   :  { %469 = vtanh.f32 %v365_v27 }
 0x14c   :  { %v468_v28 = vpop.eup %467 }
 0x14d   :  { %v470_v29 = vpop.eup %469  ;;  %370 = vst.msk [vmem:[#allocation11 + $0x8] sm:$0xff] %vm274_vm1, %v468_v28 }
 0x14e   :  { %369 = vst.msk [vmem:[#allocation11] sm:$0xff] %vm274_vm1, %v470_v29 }
 0x14f   :  { %592 = shalt.err (!%p589_p2)
}
 0x150   :  { %s593_s1 = scalar_lea.hbm %s788_s7, 256 }
 0x151   :  { %p594_p3 = scmp.ne.s32.totalorder %s788_s7, %s593_s1  ;;  %p597_p4 = scmp.lt.u32.totalorder %s593_s1, %s788_s7 }
 0x153   :  { %p599_p5 = pnand %p597_p4, %p594_p3 }
 0x155   :  { %602 = shalt.err (!%p599_p5)
}
 0x156   :  { %382 = dma.vmem_to_hbm [thread:$0]  %s377_s22, 256, %s788_s7, [#allocation4], %s613_s13, %s613_s13, %s614_s14  }
 0x157   :  { %609 = dma.done.wait [#allocation4], 256  }
 0x158   :  { %610 = vsyncadd [#allocation4], 4294967040 }
 0x159   :  { %386 = vsyncpa [#allocation3], 1 }
 0x15a   :  { %387 = vsyncpa [#allocation6], 1 }
 0x15b   :  { %388 = vsyncpa [#allocation9], 1 }
 0x15c   :  { %389 = vsyncpa [#allocation4], 1 }

</bundles_post_ra>
